<compile_context>
chip_gen: v7x
topology: tpu7x:2x2x1
jax: 0.10.0
libtpu: 0.0.40
codegen_flags: <defaults>
</compile_context>

<pallas_src>
from functools import partial

import jax
import jax.numpy as jnp
from jax.experimental import pallas as pl
from jax.experimental.pallas import tpu as pltpu

INPUT_SIZE = 30 * 2 + 1     # 61
HIDDEN = 32
N_HEADS = 4                 # a, b, c, d (each with output size 1)
LANES = 128

BIAS_LANE = INPUT_SIZE      # 61 : x lane that is always 1.0 (activates b_in row)
ONE_LANE = HIDDEN           # 32 : s lane forced to 1.0 (activates head bias row)
HEAD_COL = 64               # z lanes 64..71 : [mu_a sig_a mu_b sig_b mu_c sig_c mu_d sig_d]
CORR_ROW = 72               # W rows 72..74  : a-, b-, c- correction rows
EPS_COL = 96                # xin lanes 96..99 : eps_a..eps_d (W rows 96..99 are zero -> inert)


def _softplus(x):
    # numerically-stable softplus, matches F.softplus(beta=1)
    return jnp.maximum(x, 0.0) + jnp.log1p(jnp.exp(-jnp.abs(x)))


def policy_kernel(xin_ref, w_ref, out_ref):
    # xin row layout: [x(61) | 1.0 | 0 0 | ... | eps_a..eps_d @ 96..99 | 0 ...]
    xin = xin_ref[...]                                            # (TB, 128)
    w = w_ref[...]                                                # (128, 128)

    # fc_input: ReLU(x @ W1 + b1).  Lane 32 of s comes out as exactly 1.0 (by
    # packing), lanes 33..63 and 72..127 are exactly 0, lanes 64..71 hold
    # harmless garbage (killed by zero W rows 64..71 in the next matmul).
    s = jnp.maximum(jnp.dot(xin, w, preferred_element_type=jnp.float32), 0.0)

    # ONE matmul (same staged RHS) for all four heads' base projections
    # (+ biases via s[:,32]==1.0); results land in lanes 64..71 of z.
    z = jnp.dot(s, w, preferred_element_type=jnp.float32)         # (TB, 128)

    # lane-aligned autoregressive correction rows (full-vreg FMAs below)
    corr_a = w_ref[CORR_ROW + 0:CORR_ROW + 1, :]                  # (1, 128)
    corr_b = w_ref[CORR_ROW + 1:CORR_ROW + 2, :]
    corr_c = w_ref[CORR_ROW + 2:CORR_ROW + 3, :]

    def sample(zcur, h):
        mu = zcur[:, HEAD_COL + 2 * h:HEAD_COL + 2 * h + 1]       # (TB, 1)
        sigma = _softplus(zcur[:, HEAD_COL + 2 * h + 1:HEAD_COL + 2 * h + 2])
        eps_h = xin[:, EPS_COL + h:EPS_COL + h + 1]
        action = mu + jnp.sqrt(sigma) * eps_h                     # sigma.sqrt() as in torch
        return mu, sigma, action

    mu_a, sg_a, ac_a = sample(z, 0)
    z = z + ac_a * corr_a          # head b/c/d pick up action_a contribution
    mu_b, sg_b, ac_b = sample(z, 1)
    z = z + ac_b * corr_b          # head c/d pick up action_b contribution
    mu_c, sg_c, ac_c = sample(z, 2)
    z = z + ac_c * corr_c          # head d picks up action_c contribution
    mu_d, sg_d, ac_d = sample(z, 3)

    # single lane-dense full-block store:
    # lanes 0..3 = mu_a..mu_d, 4..7 = sigma_a..d, 8..11 = action_a..d
    tb = xin.shape[0]
    lane = jax.lax.broadcasted_iota(jnp.int32, (tb, LANES), 1)
    out = jnp.zeros((tb, LANES), jnp.float32)
    pieces = [mu_a, mu_b, mu_c, mu_d,
              sg_a, sg_b, sg_c, sg_d,
              ac_a, ac_b, ac_c, ac_d]
    for i, v in enumerate(pieces):                                # static, unrolled
        out = jnp.where(lane == i, v, out)
    out_ref[...] = out


# ----------------------------------------------------------------------------
# host-side packing (done once)
# ----------------------------------------------------------------------------
def init_params(key):
    """Deterministic init mirroring HD_Autoregressive_Policy.__init__.
    Weights stored (in_features, out_features)."""
    def linear(k, fan_in, fan_out):
        kw, kb = jax.random.split(k)
        bound = 1.0 / jnp.sqrt(fan_in)
        w = jax.random.uniform(kw, (fan_in, fan_out), jnp.float32, -bound, bound)
        b = jax.random.uniform(kb, (1, fan_out), jnp.float32, -bound, bound)
        return w, b

    keys = jax.random.split(key, 5)
    p = {}
    p["w_in"], p["b_in"] = linear(keys[0], INPUT_SIZE, HIDDEN)      # (61, 32)
    p["w_a"], p["b_a"] = linear(keys[1], HIDDEN, 2)                 # (32, 2)
    p["w_b"], p["b_b"] = linear(keys[2], 1 + HIDDEN, 2)             # (33, 2)
    p["w_c"], p["b_c"] = linear(keys[3], 2 + HIDDEN, 2)             # (34, 2)
    p["w_d"], p["b_d"] = linear(keys[4], 3 + HIDDEN, 2)             # (35, 2)
    return p


def pack_params(p):
    """Pack all weights/biases into one lane-aligned (128, 128) f32 block.

    Invariants that make the single shared RHS correct:
      * x lanes >= 62 that are non-zero (the eps lanes 96..99) hit all-zero W rows;
      * s lanes 33..63 and 72..127 are exactly zero, s[:,32] == 1.0;
      * W rows 64..71 are zero, so the garbage s lanes 64..71 never propagate;
      * correction rows live at rows 72..74 whose columns are zero elsewhere.
    """
    W = jnp.zeros((LANES, LANES), jnp.float32)
    # fc_input: weight rows 0..60, bias row 61 (activated by the 1.0 lane of x).
    W = W.at[0:INPUT_SIZE, 0:HIDDEN].set(p["w_in"])
    W = W.at[BIAS_LANE, 0:HIDDEN].set(p["b_in"].reshape(-1))
    # force s[:, 32] == 1.0 after the first matmul (folds the head biases).
    W = W.at[BIAS_LANE, ONE_LANE].set(1.0)
    # fused head base projections: 2 output lanes per head, biases on row 32.
    for h, (wk, bk) in enumerate([("w_a", "b_a"), ("w_b", "b_b"),
                                  ("w_c", "b_c"), ("w_d", "b_d")]):
        c = HEAD_COL + 2 * h
        W = W.at[0:HIDDEN, c:c + 2].set(p[wk][0:HIDDEN, :])
        W = W.at[HIDDEN, c:c + 2].set(p[bk].reshape(-1))
    # lane-aligned autoregressive correction rows (inert in both matmuls).
    # row 72: contribution of action_a to heads b, c, d
    W = W.at[CORR_ROW + 0, HEAD_COL + 2:HEAD_COL + 4].set(p["w_b"][HIDDEN + 0])
    W = W.at[CORR_ROW + 0, HEAD_COL + 4:HEAD_COL + 6].set(p["w_c"][HIDDEN + 0])
    W = W.at[CORR_ROW + 0, HEAD_COL + 6:HEAD_COL + 8].set(p["w_d"][HIDDEN + 0])
    # row 73: contribution of action_b to heads c, d
    W = W.at[CORR_ROW + 1, HEAD_COL + 4:HEAD_COL + 6].set(p["w_c"][HIDDEN + 1])
    W = W.at[CORR_ROW + 1, HEAD_COL + 6:HEAD_COL + 8].set(p["w_d"][HIDDEN + 1])
    # row 74: contribution of action_c to head d
    W = W.at[CORR_ROW + 2, HEAD_COL + 6:HEAD_COL + 8].set(p["w_d"][HIDDEN + 2])
    return W


def _pack_inputs(x, eps, b_padded):
    """Build the (b_padded, 128) input block with a single concatenate."""
    B = x.shape[0]
    ones = jnp.ones((B, 1), jnp.float32)
    gap = jnp.zeros((B, EPS_COL - INPUT_SIZE - 1), jnp.float32)      # lanes 62..95
    tail = jnp.zeros((B, LANES - EPS_COL - N_HEADS), jnp.float32)    # lanes 100..127
    xin = jnp.concatenate([x.astype(jnp.float32), ones, gap,
                           eps.astype(jnp.float32), tail], axis=1)   # (B, 128)
    if b_padded > B:
        xin = jnp.concatenate(
            [xin, jnp.zeros((b_padded - B, LANES), jnp.float32)], axis=0)
    return xin


@partial(jax.jit, static_argnames=("tile_b",))
def hd_autoregressive_policy_forward(x, eps, packed_params, *, tile_b=8):
    """Batched forward (each row == one HD_Autoregressive_Policy.forward call).

    x:   (B, 61) states;  eps: (B, 4) standard-normal draws (replaces torch.randn).
    packed_params: output of pack_params().
    Returns ([mu_a..d], [sigma_a..d], [action_a..d]), each element (B, 1).
    """
    B = x.shape[0]
    bp = ((B + tile_b - 1) // tile_b) * tile_b
    xin = _pack_inputs(x, eps, bp)

    out = pl.pallas_call(
        policy_kernel,
        out_shape=jax.ShapeDtypeStruct((bp, LANES), jnp.float32),
        grid_spec=pltpu.PrefetchScalarGridSpec(
            num_scalar_prefetch=0,
            grid=(bp // tile_b,),
            in_specs=[
                pl.BlockSpec((tile_b, LANES), lambda i: (i, 0)),
                # constant index_map: the 64 KiB weight block is DMA'd once and
                # stays VMEM-resident for the whole grid.
                pl.BlockSpec((LANES, LANES), lambda i: (0, 0)),
            ],
            out_specs=pl.BlockSpec((tile_b, LANES), lambda i: (i, 0)),
        ),
        compiler_params=pltpu.CompilerParams(
            dimension_semantics=("parallel",)),
    )(xin, packed_params)

    out = out[:B]
    mus = [out[:, i:i + 1] for i in range(N_HEADS)]
    sigmas = [out[:, N_HEADS + i:N_HEADS + i + 1] for i in range(N_HEADS)]
    actions = [out[:, 2 * N_HEADS + i:2 * N_HEADS + i + 1] for i in range(N_HEADS)]
    return mus, sigmas, actions


# ----------------------------------------------------------------------------
# pure-JAX reference of the PyTorch forward (for correctness check)
# ----------------------------------------------------------------------------
def _reference_forward(x, eps, p):
    s = jnp.maximum(x @ p["w_in"] + p["b_in"], 0.0)

    def head(w, b, state, eps_i):
        z = state @ w + b
        mu, sigma = z[:, 0:1], _softplus(z[:, 1:2])
        return mu, sigma, mu + jnp.sqrt(sigma) * eps_i

    mu_a, sg_a, ac_a = head(p["w_a"], p["b_a"], s, eps[:, 0:1])
    mu_b, sg_b, ac_b = head(p["w_b"], p["b_b"],
                            jnp.concatenate([s, ac_a], axis=1), eps[:, 1:2])
    mu_c, sg_c, ac_c = head(p["w_c"], p["b_c"],
                            jnp.concatenate([s, ac_a, ac_b], axis=1), eps[:, 2:3])
    mu_d, sg_d, ac_d = head(p["w_d"], p["b_d"],
                            jnp.concatenate([s, ac_a, ac_b, ac_c], axis=1), eps[:, 3:4])
    return ([mu_a, mu_b, mu_c, mu_d],
            [sg_a, sg_b, sg_c, sg_d],
            [ac_a, ac_b, ac_c, ac_d])


if __name__ == "__main__":
    key = jax.random.PRNGKey(0)
    kx, keps, kp = jax.random.split(key, 3)

    B = 16                                                 # small demo batch, grid of 2
    x = jax.random.normal(kx, (B, INPUT_SIZE), dtype=jnp.float32)
    eps = jax.random.normal(keps, (B, N_HEADS), dtype=jnp.float32)
    params = init_params(kp)
    packed = pack_params(params)

    mus, sigmas, actions = hd_autoregressive_policy_forward(x, eps, packed)
    jax.block_until_ready(actions)

    r_mus, r_sigmas, r_actions = _reference_forward(x, eps, params)
    for got, want in zip(mus + sigmas + actions, r_mus + r_sigmas + r_actions):
        assert got.shape == want.shape, (got.shape, want.shape)
        assert jnp.allclose(got, want, atol=1e-4, rtol=1e-4), (got, want)

    # also exercise the module's native batch-1 call path (x.view(1, -1) case)
    m1, s1, a1 = hd_autoregressive_policy_forward(x[:1], eps[:1], packed)
    jax.block_until_ready(a1)
    assert jnp.allclose(a1[0], r_actions[0][:1], atol=1e-4, rtol=1e-4)

    print("KERNEL_OK")
</pallas_src>

<mosaic_0001>
module attributes {stable_mosaic.version = 11 : i64} {
  func.func @policy_kernel(%arg0: i32, %arg1: memref<8x128xf32, #tpu.memory_space<vmem>>, %arg2: memref<128x128xf32, #tpu.memory_space<vmem>>, %arg3: memref<8x128xf32, #tpu.memory_space<vmem>>) attributes {dimension_semantics = [#tpu.dimension_semantics<parallel>], iteration_bounds = array<i64: 2>, scalar_prefetch = 0 : i64, scratch_operands = 0 : i64, tpu.core_type = #tpu.core_type<tc>, window_params = [{transform_indices = @transform_0, window_bounds = array<i64: 8, 128>}, {pipeline_mode = #tpu.pipeline_mode<synchronous>, transform_indices = @transform_1, window_bounds = array<i64: 128, 128>}, {transform_indices = @transform_2, window_bounds = array<i64: 8, 128>}]} {
    %c0 = arith.constant 0 : index
    %c0_0 = arith.constant 0 : index
    %0 = vector.load %arg1[%c0, %c0_0] : memref<8x128xf32, #tpu.memory_space<vmem>>, vector<8x128xf32>
    %c0_1 = arith.constant 0 : index
    %c0_2 = arith.constant 0 : index
    %1 = vector.load %arg2[%c0_1, %c0_2] : memref<128x128xf32, #tpu.memory_space<vmem>>, vector<128x128xf32>
    %cst = arith.constant dense<0.000000e+00> : vector<8x128xf32>
    %2 = tpu.matmul %0, %1, %cst {dimension_numbers = #tpu.dot_dimension_numbers<[1], [0], [0], [1], [0, 0, 1, 1], [], []>} : vector<8x128xf32>, vector<128x128xf32>, vector<8x128xf32> -> vector<8x128xf32>
    %cst_3 = arith.constant 0.000000e+00 : f32
    %3 = vector.broadcast %cst_3 : f32 to vector<8x128xf32>
    %4 = arith.maximumf %2, %3 : vector<8x128xf32>
    %cst_4 = arith.constant dense<0.000000e+00> : vector<8x128xf32>
    %5 = tpu.matmul %4, %1, %cst_4 {dimension_numbers = #tpu.dot_dimension_numbers<[1], [0], [0], [1], [0, 0, 1, 1], [], []>} : vector<8x128xf32>, vector<128x128xf32>, vector<8x128xf32> -> vector<8x128xf32>
    %c72 = arith.constant 72 : index
    %c0_5 = arith.constant 0 : index
    %6 = vector.load %arg2[%c72, %c0_5] : memref<128x128xf32, #tpu.memory_space<vmem>>, vector<1x128xf32>
    %c73 = arith.constant 73 : index
    %c0_6 = arith.constant 0 : index
    %7 = vector.load %arg2[%c73, %c0_6] : memref<128x128xf32, #tpu.memory_space<vmem>>, vector<1x128xf32>
    %c74 = arith.constant 74 : index
    %c0_7 = arith.constant 0 : index
    %8 = vector.load %arg2[%c74, %c0_7] : memref<128x128xf32, #tpu.memory_space<vmem>>, vector<1x128xf32>
    %9 = vector.extract_strided_slice %5 {offsets = [0, 64], sizes = [8, 1], strides = [1, 1]} : vector<8x128xf32> to vector<8x1xf32>
    %10 = vector.extract_strided_slice %5 {offsets = [0, 65], sizes = [8, 1], strides = [1, 1]} : vector<8x128xf32> to vector<8x1xf32>
    %cst_8 = arith.constant 0.000000e+00 : f32
    %11 = vector.broadcast %cst_8 : f32 to vector<8x1xf32>
    %12 = arith.maximumf %10, %11 : vector<8x1xf32>
    %13 = math.absf %10 : vector<8x1xf32>
    %cst_9 = arith.constant 0.000000e+00 : f32
    %14 = vector.broadcast %cst_9 : f32 to vector<8x1xf32>
    %15 = arith.subf %14, %13 : vector<8x1xf32>
    %16 = math.exp %15 : vector<8x1xf32>
    %17 = math.log1p %16 : vector<8x1xf32>
    %18 = arith.addf %12, %17 : vector<8x1xf32>
    %19 = vector.extract_strided_slice %0 {offsets = [0, 96], sizes = [8, 1], strides = [1, 1]} : vector<8x128xf32> to vector<8x1xf32>
    %20 = math.sqrt %18 : vector<8x1xf32>
    %21 = arith.mulf %20, %19 : vector<8x1xf32>
    %22 = arith.addf %9, %21 : vector<8x1xf32>
    %23 = vector.broadcast %22 : vector<8x1xf32> to vector<8x128xf32>
    %24 = vector.broadcast %6 : vector<1x128xf32> to vector<8x128xf32>
    %25 = arith.mulf %23, %24 : vector<8x128xf32>
    %26 = arith.addf %5, %25 : vector<8x128xf32>
    %27 = vector.extract_strided_slice %26 {offsets = [0, 66], sizes = [8, 1], strides = [1, 1]} : vector<8x128xf32> to vector<8x1xf32>
    %28 = vector.extract_strided_slice %26 {offsets = [0, 67], sizes = [8, 1], strides = [1, 1]} : vector<8x128xf32> to vector<8x1xf32>
    %cst_10 = arith.constant 0.000000e+00 : f32
    %29 = vector.broadcast %cst_10 : f32 to vector<8x1xf32>
    %30 = arith.maximumf %28, %29 : vector<8x1xf32>
    %31 = math.absf %28 : vector<8x1xf32>
    %cst_11 = arith.constant 0.000000e+00 : f32
    %32 = vector.broadcast %cst_11 : f32 to vector<8x1xf32>
    %33 = arith.subf %32, %31 : vector<8x1xf32>
    %34 = math.exp %33 : vector<8x1xf32>
    %35 = math.log1p %34 : vector<8x1xf32>
    %36 = arith.addf %30, %35 : vector<8x1xf32>
    %37 = vector.extract_strided_slice %0 {offsets = [0, 97], sizes = [8, 1], strides = [1, 1]} : vector<8x128xf32> to vector<8x1xf32>
    %38 = math.sqrt %36 : vector<8x1xf32>
    %39 = arith.mulf %38, %37 : vector<8x1xf32>
    %40 = arith.addf %27, %39 : vector<8x1xf32>
    %41 = vector.broadcast %40 : vector<8x1xf32> to vector<8x128xf32>
    %42 = vector.broadcast %7 : vector<1x128xf32> to vector<8x128xf32>
    %43 = arith.mulf %41, %42 : vector<8x128xf32>
    %44 = arith.addf %26, %43 : vector<8x128xf32>
    %45 = vector.extract_strided_slice %44 {offsets = [0, 68], sizes = [8, 1], strides = [1, 1]} : vector<8x128xf32> to vector<8x1xf32>
    %46 = vector.extract_strided_slice %44 {offsets = [0, 69], sizes = [8, 1], strides = [1, 1]} : vector<8x128xf32> to vector<8x1xf32>
    %cst_12 = arith.constant 0.000000e+00 : f32
    %47 = vector.broadcast %cst_12 : f32 to vector<8x1xf32>
    %48 = arith.maximumf %46, %47 : vector<8x1xf32>
    %49 = math.absf %46 : vector<8x1xf32>
    %cst_13 = arith.constant 0.000000e+00 : f32
    %50 = vector.broadcast %cst_13 : f32 to vector<8x1xf32>
    %51 = arith.subf %50, %49 : vector<8x1xf32>
    %52 = math.exp %51 : vector<8x1xf32>
    %53 = math.log1p %52 : vector<8x1xf32>
    %54 = arith.addf %48, %53 : vector<8x1xf32>
    %55 = vector.extract_strided_slice %0 {offsets = [0, 98], sizes = [8, 1], strides = [1, 1]} : vector<8x128xf32> to vector<8x1xf32>
    %56 = math.sqrt %54 : vector<8x1xf32>
    %57 = arith.mulf %56, %55 : vector<8x1xf32>
    %58 = arith.addf %45, %57 : vector<8x1xf32>
    %59 = vector.broadcast %58 : vector<8x1xf32> to vector<8x128xf32>
    %60 = vector.broadcast %8 : vector<1x128xf32> to vector<8x128xf32>
    %61 = arith.mulf %59, %60 : vector<8x128xf32>
    %62 = arith.addf %44, %61 : vector<8x128xf32>
    %63 = vector.extract_strided_slice %62 {offsets = [0, 70], sizes = [8, 1], strides = [1, 1]} : vector<8x128xf32> to vector<8x1xf32>
    %64 = vector.extract_strided_slice %62 {offsets = [0, 71], sizes = [8, 1], strides = [1, 1]} : vector<8x128xf32> to vector<8x1xf32>
    %cst_14 = arith.constant 0.000000e+00 : f32
    %65 = vector.broadcast %cst_14 : f32 to vector<8x1xf32>
    %66 = arith.maximumf %64, %65 : vector<8x1xf32>
    %67 = math.absf %64 : vector<8x1xf32>
    %cst_15 = arith.constant 0.000000e+00 : f32
    %68 = vector.broadcast %cst_15 : f32 to vector<8x1xf32>
    %69 = arith.subf %68, %67 : vector<8x1xf32>
    %70 = math.exp %69 : vector<8x1xf32>
    %71 = math.log1p %70 : vector<8x1xf32>
    %72 = arith.addf %66, %71 : vector<8x1xf32>
    %73 = vector.extract_strided_slice %0 {offsets = [0, 99], sizes = [8, 1], strides = [1, 1]} : vector<8x128xf32> to vector<8x1xf32>
    %74 = math.sqrt %72 : vector<8x1xf32>
    %75 = arith.mulf %74, %73 : vector<8x1xf32>
    %76 = arith.addf %63, %75 : vector<8x1xf32>
    %77 = tpu.iota {dimensions = array<i32: 1>} : vector<8x128xi32>
    %cst_16 = arith.constant 0.000000e+00 : f32
    %78 = vector.broadcast %cst_16 : f32 to vector<8x128xf32>
    %c0_i32 = arith.constant 0 : i32
    %79 = vector.broadcast %c0_i32 : i32 to vector<8x128xi32>
    %80 = arith.cmpi eq, %77, %79 : vector<8x128xi32>
    %81 = vector.shape_cast %9 : vector<8x1xf32> to vector<8x1xf32>
    %82 = vector.broadcast %81 : vector<8x1xf32> to vector<8x128xf32>
    %83 = arith.select %80, %82, %78 : vector<8x128xi1>, vector<8x128xf32>
    %c1_i32 = arith.constant 1 : i32
    %84 = vector.broadcast %c1_i32 : i32 to vector<8x128xi32>
    %85 = arith.cmpi eq, %77, %84 : vector<8x128xi32>
    %86 = vector.shape_cast %27 : vector<8x1xf32> to vector<8x1xf32>
    %87 = vector.broadcast %86 : vector<8x1xf32> to vector<8x128xf32>
    %88 = arith.select %85, %87, %83 : vector<8x128xi1>, vector<8x128xf32>
    %c2_i32 = arith.constant 2 : i32
    %89 = vector.broadcast %c2_i32 : i32 to vector<8x128xi32>
    %90 = arith.cmpi eq, %77, %89 : vector<8x128xi32>
    %91 = vector.shape_cast %45 : vector<8x1xf32> to vector<8x1xf32>
    %92 = vector.broadcast %91 : vector<8x1xf32> to vector<8x128xf32>
    %93 = arith.select %90, %92, %88 : vector<8x128xi1>, vector<8x128xf32>
    %c3_i32 = arith.constant 3 : i32
    %94 = vector.broadcast %c3_i32 : i32 to vector<8x128xi32>
    %95 = arith.cmpi eq, %77, %94 : vector<8x128xi32>
    %96 = vector.shape_cast %63 : vector<8x1xf32> to vector<8x1xf32>
    %97 = vector.broadcast %96 : vector<8x1xf32> to vector<8x128xf32>
    %98 = arith.select %95, %97, %93 : vector<8x128xi1>, vector<8x128xf32>
    %c4_i32 = arith.constant 4 : i32
    %99 = vector.broadcast %c4_i32 : i32 to vector<8x128xi32>
    %100 = arith.cmpi eq, %77, %99 : vector<8x128xi32>
    %101 = vector.shape_cast %18 : vector<8x1xf32> to vector<8x1xf32>
    %102 = vector.broadcast %101 : vector<8x1xf32> to vector<8x128xf32>
    %103 = arith.select %100, %102, %98 : vector<8x128xi1>, vector<8x128xf32>
    %c5_i32 = arith.constant 5 : i32
    %104 = vector.broadcast %c5_i32 : i32 to vector<8x128xi32>
    %105 = arith.cmpi eq, %77, %104 : vector<8x128xi32>
    %106 = vector.shape_cast %36 : vector<8x1xf32> to vector<8x1xf32>
    %107 = vector.broadcast %106 : vector<8x1xf32> to vector<8x128xf32>
    %108 = arith.select %105, %107, %103 : vector<8x128xi1>, vector<8x128xf32>
    %c6_i32 = arith.constant 6 : i32
    %109 = vector.broadcast %c6_i32 : i32 to vector<8x128xi32>
    %110 = arith.cmpi eq, %77, %109 : vector<8x128xi32>
    %111 = vector.shape_cast %54 : vector<8x1xf32> to vector<8x1xf32>
    %112 = vector.broadcast %111 : vector<8x1xf32> to vector<8x128xf32>
    %113 = arith.select %110, %112, %108 : vector<8x128xi1>, vector<8x128xf32>
    %c7_i32 = arith.constant 7 : i32
    %114 = vector.broadcast %c7_i32 : i32 to vector<8x128xi32>
    %115 = arith.cmpi eq, %77, %114 : vector<8x128xi32>
    %116 = vector.shape_cast %72 : vector<8x1xf32> to vector<8x1xf32>
    %117 = vector.broadcast %116 : vector<8x1xf32> to vector<8x128xf32>
    %118 = arith.select %115, %117, %113 : vector<8x128xi1>, vector<8x128xf32>
    %c8_i32 = arith.constant 8 : i32
    %119 = vector.broadcast %c8_i32 : i32 to vector<8x128xi32>
    %120 = arith.cmpi eq, %77, %119 : vector<8x128xi32>
    %121 = vector.shape_cast %22 : vector<8x1xf32> to vector<8x1xf32>
    %122 = vector.broadcast %121 : vector<8x1xf32> to vector<8x128xf32>
    %123 = arith.select %120, %122, %118 : vector<8x128xi1>, vector<8x128xf32>
    %c9_i32 = arith.constant 9 : i32
    %124 = vector.broadcast %c9_i32 : i32 to vector<8x128xi32>
    %125 = arith.cmpi eq, %77, %124 : vector<8x128xi32>
    %126 = vector.shape_cast %40 : vector<8x1xf32> to vector<8x1xf32>
    %127 = vector.broadcast %126 : vector<8x1xf32> to vector<8x128xf32>
    %128 = arith.select %125, %127, %123 : vector<8x128xi1>, vector<8x128xf32>
    %c10_i32 = arith.constant 10 : i32
    %129 = vector.broadcast %c10_i32 : i32 to vector<8x128xi32>
    %130 = arith.cmpi eq, %77, %129 : vector<8x128xi32>
    %131 = vector.shape_cast %58 : vector<8x1xf32> to vector<8x1xf32>
    %132 = vector.broadcast %131 : vector<8x1xf32> to vector<8x128xf32>
    %133 = arith.select %130, %132, %128 : vector<8x128xi1>, vector<8x128xf32>
    %c11_i32 = arith.constant 11 : i32
    %134 = vector.broadcast %c11_i32 : i32 to vector<8x128xi32>
    %135 = arith.cmpi eq, %77, %134 : vector<8x128xi32>
    %136 = vector.shape_cast %76 : vector<8x1xf32> to vector<8x1xf32>
    %137 = vector.broadcast %136 : vector<8x1xf32> to vector<8x128xf32>
    %138 = arith.select %135, %137, %133 : vector<8x128xi1>, vector<8x128xf32>
    %c0_17 = arith.constant 0 : index
    %c0_18 = arith.constant 0 : index
    %139 = vector.load %arg3[%c0_17, %c0_18] : memref<8x128xf32, #tpu.memory_space<vmem>>, vector<8x128xf32>
    tpu.vector_store %arg3[%c0_17, %c0_18], %138 {strides = array<i32>} : memref<8x128xf32, #tpu.memory_space<vmem>>, vector<8x128xf32>,
    return
  }
  func.func @transform_0(%arg0: i32) -> (i32, i32) {
    %c0_i32 = arith.constant 0 : i32
    %c0_i32_0 = arith.constant 0 : i32
    return %arg0, %c0_i32 : i32, i32
  }
  func.func @transform_1(%arg0: i32) -> (i32, i32) {
    %c0_i32 = arith.constant 0 : i32
    %c0_i32_0 = arith.constant 0 : i32
    %c0_i32_1 = arith.constant 0 : i32
    return %c0_i32, %c0_i32_0 : i32, i32
  }
  func.func @transform_2(%arg0: i32) -> (i32, i32) {
    %c0_i32 = arith.constant 0 : i32
    %c0_i32_0 = arith.constant 0 : i32
    return %arg0, %c0_i32 : i32, i32
  }
}

</mosaic_0001>

<bundles_post_ra>
// kernel: hd_autoregressive_policy_forward.1
= control target key start
LH: loop header
LB: loop body
LE: loop exit
PB: predicated region body
PF: predicated region fallthrough
CT: control target
= control target key end

     0   :  { %s846_s9 = smov 0   ;;  %s995_s0 = inlined_call_operand.vmem [shape: f32[16,128], index: 0, kind: input, shape index: {}]   ;;  %s996_s1 = inlined_call_operand.vmem [shape: f32[128,128], index: 1, kind: input, shape index: {}]   ;;  %s997_s2 = inlined_call_operand.vmem [shape: f32[16,128], index: 2, kind: output, shape index: {}]  }
   0x1 LB: > { %s583_s10 = sadd.s32 4294967295, %s813_s9   ;;  %p587_p0 = scmp.ge.s32.totalorder %s813_s9, 1  ;;  %s813_s9 = sphi %s846_s9, %s12_s9  }
   0x2   : > { %p111_p1 = scmp.lt.s32.totalorder %s813_s9, 3 }
   0x4   : > { %p112_p2 = pnand %p587_p0, %p111_p1 }
   0x5   : > { %v140_v0 = vld [vmem:[%s996_s1] sm:$0xff] (!%p112_p2)  ;;  %v141_v1 = vld [vmem:[%s996_s1 + $0x8] sm:$0xff] (!%p112_p2)  ;;  %v142_v2 = vld [vmem:[%s996_s1 + $0x10] sm:$0xff] (!%p112_p2)  ;;  %v815_v3 = vmov (!%p112_p2), 0.0|0.0   ;;  %vm816_vm0 = vmmov (!%p112_p2), 0   ;;  %v817_v6 = vmov (!%p112_p2), 0.0  }
   0x6   : > { %115 = sbr.rel (%p112_p2) target bundleno = 1667 (0x683), region = 28  ;;  %699 = vmatprep.subr.bf16.mxu0 (!%p112_p2), %v815_v3  ;;  %v700_v4 = vpack.c.bf16 (!%p112_p2), %v141_v1, %v140_v0  ;;  %v143_v5 = vld [vmem:[%s996_s1 + $0x18] sm:$0xff] (!%p112_p2)  ;;  %661 = vmatprep.mubr.msk.f32.mxu0 (!%p112_p2), %vm816_vm0, %v817_v6  ;;  %v144_v8 = vld [vmem:[%s996_s1 + $0x20] sm:$0xff] (!%p112_p2)  ;;  %v145_v9 = vld [vmem:[%s996_s1 + $0x28] sm:$0xff] (!%p112_p2)  ;;  %p131_p3 = scmp.lt.s32.totalorder (!%p112_p2), %s583_s10, 1  ;;  %v819_v46 = vmov (!%p112_p2), 64  }
   0x7   : > { %723 = vmatprep.subr.bf16.mxu1 (!%p112_p2), %v815_v3  ;;  %696 = vmatprep.mubr.msk.f32.mxu1 (!%p112_p2), %vm816_vm0, %v817_v6  ;;  %v703_v7 = vpack.c.bf16 (!%p112_p2), %v143_v5, %v142_v2  ;;  %v706_v10 = vpack.c.bf16 (!%p112_p2), %v145_v9, %v144_v8  ;;  %v146_v11 = vld [vmem:[%s996_s1 + $0x30] sm:$0xff] (!%p112_p2)  ;;  %v147_v12 = vld [vmem:[%s996_s1 + $0x38] sm:$0xff] (!%p112_p2)  ;;  %v148_v14 = vld [vmem:[%s996_s1 + $0x40] sm:$0xff] (!%p112_p2)  ;;  %s818_s21 = smov (!%p112_p2), 97   ;;  %s820_s22 = smov (!%p112_p2), 127  }
   0x8   : > { %701 = vmatpush3.bf16.msra.mxu0 (!%p112_p2), %v700_v4  ;;  %725 = vmatpush3.bf16.msra.mxu1 (!%p112_p2), %v700_v4  ;;  %v709_v13 = vpack.c.bf16 (!%p112_p2), %v147_v12, %v146_v11  ;;  %v149_v15 = vld [vmem:[%s996_s1 + $0x48] sm:$0xff] (!%p112_p2)  ;;  %v150_v17 = vld [vmem:[%s996_s1 + $0x50] sm:$0xff] (!%p112_p2)  ;;  %v151_v18 = vld [vmem:[%s996_s1 + $0x58] sm:$0xff] (!%p112_p2)  ;;  %s821_s23 = smov (!%p112_p2), 98   ;;  %s823_s26 = smov (!%p112_p2), 99  }
   0x9   : > { %702 = vmatprep.subr.bf16.mxu0 (!%p112_p2), %v815_v3  ;;  %726 = vmatprep.subr.bf16.mxu1 (!%p112_p2), %v815_v3  ;;  %v712_v16 = vpack.c.bf16 (!%p112_p2), %v149_v15, %v148_v14  ;;  %v715_v19 = vpack.c.bf16 (!%p112_p2), %v151_v18, %v150_v17  ;;  %v152_v20 = vld [vmem:[%s996_s1 + $0x60] sm:$0xff] (!%p112_p2)  ;;  %v153_v21 = vld [vmem:[%s996_s1 + $0x68] sm:$0xff] (!%p112_p2)  ;;  %v154_v23 = vld [vmem:[%s996_s1 + $0x70] sm:$0xff] (!%p112_p2)  ;;  %s825_s29 = smov (!%p112_p2), 100  }
   0xa   : > { %v718_v22 = vpack.c.bf16 (!%p112_p2), %v153_v21, %v152_v20  ;;  %v155_v24 = vld [vmem:[%s996_s1 + $0x78] sm:$0xff] (!%p112_p2)  ;;  %771 = vset.pattern.permute.xlu1 (!%p112_p2), %v819_v46  ;;  %v590_v56 = vld [vmem:[%s996_s1 + $0x48] ss:$0 sm:$0xff] (!%p112_p2)  ;;  %v591_v20 = vld [vmem:[%s996_s1 + $0x49] ss:$0 sm:$0xff] (!%p112_p2) }
   0xb   : > { %v721_v25 = vpack.c.bf16 (!%p112_p2), %v155_v24, %v154_v23 }
   0xc   : > { %704 = vmatpush3.bf16.msra.mxu0 (!%p112_p2), %v703_v7  ;;  %728 = vmatpush3.bf16.msra.mxu1 (!%p112_p2), %v703_v7 }
   0xd   : > { %705 = vmatprep.subr.bf16.mxu0 %v815_v3  ;;  %729 = vmatprep.subr.bf16.mxu1 %v815_v3  ;;  %s999_s10 = smov (!%p131_p3, %s583_s10), 1 }
   0xe   : > { %s588_s17 = sshll.u32 %s999_s10, 3 }
   0xf   : > { %s134_s20 = scalar_lea.vmem %s995_s0, %s588_s17  ;;  %s138_s6 = scalar_lea.vmem %s997_s2, %s588_s17 }
  0x10   : > { %707 = vmatpush3.bf16.msra.mxu0 %v706_v10  ;;  %731 = vmatpush3.bf16.msra.mxu1 %v706_v10  ;;  %v914_v26 = vld [vmem:[%s134_s20] sm:$0xff]  ;;  %v822_v10 = vmov 66  }
  0x11   : > { %708 = vmatprep.subr.bf16.mxu0 %v815_v3  ;;  %732 = vmatprep.subr.bf16.mxu1 %v815_v3 }
  0x12   : > { %323 = vrot.lane.b32.xlu0 %v914_v26, %s818_s21 }
  0x14   : > { %710 = vmatpush3.bf16.msra.mxu0 %v709_v13  ;;  %734 = vmatpush3.bf16.msra.mxu1 %v709_v13 }
  0x15   : > { %711 = vmatprep.subr.bf16.mxu0 %v815_v3  ;;  %735 = vmatprep.subr.bf16.mxu1 %v815_v3 }
  0x18   : > { %713 = vmatpush3.bf16.msra.mxu0 %v712_v16  ;;  %737 = vmatpush3.bf16.msra.mxu1 %v712_v16 }
  0x19   : > { %714 = vmatprep.subr.bf16.mxu0 %v815_v3  ;;  %738 = vmatprep.subr.bf16.mxu1 %v815_v3 }
  0x1c   : > { %716 = vmatpush3.bf16.msra.mxu0 %v715_v19  ;;  %740 = vmatpush3.bf16.msra.mxu1 %v715_v19 }
  0x1d   : > { %717 = vmatprep.subr.bf16.mxu0 %v815_v3  ;;  %741 = vmatprep.subr.bf16.mxu1 %v815_v3 }
  0x20   : > { %719 = vmatpush3.bf16.msra.mxu0 %v718_v22  ;;  %743 = vmatpush3.bf16.msra.mxu1 %v718_v22 }
  0x21   : > { %720 = vmatprep.subr.bf16.mxu0 %v815_v3  ;;  %744 = vmatprep.subr.bf16.mxu1 %v815_v3 }
  0x24   : > { %722 = vmatpush3.bf16.msra.mxu0 %v721_v25  ;;  %746 = vmatpush3.bf16.msra.mxu1 %v721_v25 }
  0x27   : > { %662 = vmatmul.mubr.f32.vlgmr.msra.gmra.mrb[0].mxu0 %v914_v26 }
  0x84   : > { %v324_v49 = vpop.permute.xlu0 %323 }
  0xfa   : > { %v222_v27 = vpop.f32.mrb[0].mxu0 }
  0xfb   : > { %v226_v28 = vmax.f32 %v222_v27, 0.0  ;;  %v663_v29 = vpop.f32.mrb[1].mxu0 }
  0xfd   : > { %697 = vmatmul.mubr.f32.vlgmr.msra.gmra.mrb[0].mxu1 %v226_v28 }
 0x1d0   : > { %v918_v30 = vpop.f32.mrb[0].mxu1 }
 0x1d1   : > { %v301_v31 = vand.u32 2147483647, %v918_v30  ;;  %v698_v32 = vpop.f32.mrb[1].mxu1  ;;  %v300_v43 = vmax.f32 %v918_v30, 0.0 }
 0x1d3   : > { %v302_v33 = vsub.f32 0.0, %v301_v31 }
 0x1d5   : > { %v303_v34 = vmul.f32 1.442695, %v302_v33 }
 0x1d7   : > { %783 = vpow2.f32 %v303_v34 }
 0x1e1   : > { %v784_v35 = vpop.eup %783 }
 0x1e2   : > { %v305_v36 = vadd.f32 1.0, %v784_v35  ;;  %v308_v37 = vmul.f32 -0.5, %v784_v35  ;;  %v311_v39 = vand.u32 2147483647, %v784_v35 }
 0x1e4   : > { %785 = vlog2.f32 %v305_v36  ;;  %v309_v38 = vadd.f32 1.0, %v308_v37  ;;  %vm312_vm1 = vcmp.lt.f32.partialorder %v311_v39, 0.0004427343 }
 0x1e6   : > { %v310_v42 = vmul.f32 %v784_v35, %v309_v38 }
 0x1ee   : > { %v786_v40 = vpop.eup %785 }
 0x1ef   : > { %v307_v41 = vmul.f32 0.6931472, %v786_v40  ;;  %v824_v40 = vmov 68  }
 0x1f0   : > { %773 = vset.pattern.permute.xlu0 %v824_v40 }
 0x1f1   : > { %v313_v44 = vsel %vm312_vm1, %v310_v42, %v307_v41 }
 0x1f2   : > { %v922_v45 = vadd.f32 %v313_v44, %v300_v43 }
 0x1f4   : > { %787 = vrsqrt.f32 %v922_v45  ;;  %vm317_vm2 = vcmp.eq.f32.partialorder %v922_v45, inf  ;;  %v320_v50 = vand.u32 2147483648, %v922_v45  ;;  %vm319_vm3 = vcmp.eq.f32.partialorder %v922_v45, 0.0 }
 0x1fe   : > { %v788_v47 = vpop.eup %787 }
 0x1ff   : > { %v316_v48 = vmul.f32 %v788_v47, %v922_v45 }
 0x201   : > { %v318_v51 = vsel %vm317_vm2, %v922_v45, %v316_v48 }
 0x202   : > { %v321_v52 = vsel %vm319_vm3, %v320_v50, %v318_v51 }
 0x203   : > { %v326_v53 = vmul.f32 %v324_v49, %v321_v52  ;;  %v826_v52 = vmov 70  }
 0x205   : > { %328 = vrot.lane.b32.xlu0 %v326_v53, %s820_s22  ;;  %v592_v53 = vld [vmem:[%s996_s1 + $0x4a] ss:$0 sm:$0xff] }
 0x277   : > { %v329_v54 = vpop.permute.xlu0 %328 }
 0x278   : > { %v331_v55 = vadd.f32 %v329_v54, %v918_v30 }
 0x27a   : > { %334 = vperm.xlu1 %771, %v331_v55  }
 0x27e   : > { %365 = vrot.lane.b32.xlu1 %v914_v26, %s821_s23 }
 0x27f   : > { %772 = vset.pattern.permute.xlu1 %v822_v10 }
 0x2f9   : > { %v937_v57 = vpop.permute.xlu1 %334 }
 0x2fa   : > { %v341_v58 = vmul.f32 %v590_v56, %v937_v57 }
 0x2fc   : > { %v941_v59 = vadd.f32 %v341_v58, %v918_v30 }
 0x2fd   : > { %v366_v14 = vpop.permute.xlu1 %365 }
 0x2fe   : > { %v344_v60 = vand.u32 2147483647, %v941_v59  ;;  %v343_v7 = vmax.f32 %v941_v59, 0.0 }
 0x300   : > { %v345_v61 = vsub.f32 0.0, %v344_v60 }
 0x302   : > { %v346_v62 = vmul.f32 1.442695, %v345_v61  ;;  %v827_v61 = vmov 69  }
 0x304   : > { %789 = vpow2.f32 %v346_v62 }
 0x30e   : > { %v790_v63 = vpop.eup %789 }
 0x30f   : > { %v348_v0 = vadd.f32 1.0, %v790_v63  ;;  %v351_v1 = vmul.f32 -0.5, %v790_v63  ;;  %v354_v3 = vand.u32 2147483647, %v790_v63 }
 0x311   : > { %791 = vlog2.f32 %v348_v0  ;;  %v352_v2 = vadd.f32 1.0, %v351_v1  ;;  %vm355_vm4 = vcmp.lt.f32.partialorder %v354_v3, 0.0004427343 }
 0x313   : > { %v353_v6 = vmul.f32 %v790_v63, %v352_v2 }
 0x31b   : > { %v792_v4 = vpop.eup %791 }
 0x31c   : > { %v350_v5 = vmul.f32 0.6931472, %v792_v4 }
 0x31e   : > { %v356_v8 = vsel %vm355_vm4, %v353_v6, %v350_v5 }
 0x31f   : > { %v945_v9 = vadd.f32 %v356_v8, %v343_v7 }
 0x321   : > { %793 = vrsqrt.f32 %v945_v9  ;;  %vm360_vm5 = vcmp.eq.f32.partialorder %v945_v9, inf  ;;  %v363_v13 = vand.u32 2147483648, %v945_v9  ;;  %vm362_vm6 = vcmp.eq.f32.partialorder %v945_v9, 0.0 }
 0x32b   : > { %v794_v11 = vpop.eup %793 }
 0x32c   : > { %v359_v12 = vmul.f32 %v794_v11, %v945_v9 }
 0x32e   : > { %v361_v15 = vsel %vm360_vm5, %v945_v9, %v359_v12 }
 0x32f   : > { %v364_v16 = vsel %vm362_vm6, %v363_v13, %v361_v15  ;;  %v828_v15 = vmov 65  }
 0x330   : > { %v368_v17 = vmul.f32 %v366_v14, %v364_v16  ;;  %v829_v16 = vmov 67  }
 0x332   : > { %370 = vrot.lane.b32.xlu0 %v368_v17, %s820_s22  ;;  %v830_v17 = vmov 71  }
 0x336   : > { %407 = vrot.lane.b32.xlu0 %v914_v26, %s823_s26 }
 0x3a4   : > { %v371_v18 = vpop.permute.xlu0 %370 }
 0x3a5   : > { %v373_v19 = vadd.f32 %v371_v18, %v941_v59 }
 0x3a7   : > { %376 = vperm.xlu1 %772, %v373_v19  }
 0x3a8   : > { %v408_v44 = vpop.permute.xlu0 %407 }
 0x426   : > { %v959_v21 = vpop.permute.xlu1 %376 }
 0x427   : > { %v383_v22 = vmul.f32 %v591_v20, %v959_v21 }
 0x429   : > { %v963_v23 = vadd.f32 %v383_v22, %v941_v59 }
 0x42b   : > { %v386_v24 = vand.u32 2147483647, %v963_v23  ;;  %v385_v37 = vmax.f32 %v963_v23, 0.0 }
 0x42d   : > { %v387_v25 = vsub.f32 0.0, %v386_v24 }
 0x42f   : > { %v388_v27 = vmul.f32 1.442695, %v387_v25 }
 0x431   : > { %795 = vpow2.f32 %v388_v27 }
 0x43b   : > { %v796_v28 = vpop.eup %795 }
 0x43c   : > { %v390_v29 = vadd.f32 1.0, %v796_v28  ;;  %v393_v31 = vmul.f32 -0.5, %v796_v28  ;;  %v396_v33 = vand.u32 2147483647, %v796_v28 }
 0x43e   : > { %797 = vlog2.f32 %v390_v29  ;;  %v394_v32 = vadd.f32 1.0, %v393_v31  ;;  %vm397_vm7 = vcmp.lt.f32.partialorder %v396_v33, 0.0004427343 }
 0x440   : > { %v395_v36 = vmul.f32 %v796_v28, %v394_v32 }
 0x448   : > { %v798_v34 = vpop.eup %797 }
 0x449   : > { %v392_v35 = vmul.f32 0.6931472, %v798_v34 }
 0x44b   : > { %v398_v38 = vsel %vm397_vm7, %v395_v36, %v392_v35 }
 0x44c   : > { %v399_v39 = vadd.f32 %v398_v38, %v385_v37 }
 0x44e   : > { %799 = vrsqrt.f32 %v399_v39  ;;  %vm402_vm8 = vcmp.eq.f32.partialorder %v399_v39, inf  ;;  %v405_v43 = vand.u32 2147483648, %v399_v39  ;;  %vm404_vm9 = vcmp.eq.f32.partialorder %v399_v39, 0.0 }
 0x458   : > { %v800_v41 = vpop.eup %799 }
 0x459   : > { %v401_v42 = vmul.f32 %v800_v41, %v399_v39 }
 0x45b   : > { %v403_v47 = vsel %vm402_vm8, %v399_v39, %v401_v42 }
 0x45c   : > { %v406_v48 = vsel %vm404_vm9, %v405_v43, %v403_v47 }
 0x45d   : > { %v410_v49 = vmul.f32 %v408_v44, %v406_v48 }
 0x45f   : > { %412 = vrot.lane.b32.xlu1 %v410_v49, %s820_s22 }
 0x463   : > { %449 = vrot.lane.b32.xlu1 %v914_v26, %s825_s29 }
 0x4d1   : > { %v413_v50 = vpop.permute.xlu1 %412 }
 0x4d2   : > { %v415_v51 = vadd.f32 %v413_v50, %v963_v23 }
 0x4d4   : > { %418 = vperm.xlu0 %773, %v415_v51  }
 0x4d5   : > { %v450_v11 = vpop.permute.xlu1 %449 }
 0x4d8   : > { %774 = vset.pattern.permute.xlu0 %v819_v46 }
 0x4d9   : > { %463 = vperm.xlu0 %774, %v918_v30  }
 0x4dd   : > { %776 = vset.pattern.permute.xlu0 %v826_v52 }
 0x553   : > { %v975_v54 = vpop.permute.xlu0 %418 }
 0x554   : > { %v425_v55 = vmul.f32 %v592_v53, %v975_v54 }
 0x556   : > { %v426_v26 = vadd.f32 %v425_v55, %v963_v23 }
 0x558   : > { %v428_v56 = vand.u32 2147483647, %v426_v26  ;;  %484 = vperm.xlu0 %776, %v426_v26   ;;  %v427_v4 = vmax.f32 %v426_v26, 0.0  ;;  %v464_v25 = vpop.permute.xlu0 %463 }
 0x55a   : > { %v429_v58 = vsub.f32 0.0, %v428_v56 }
 0x55c   : > { %v430_v60 = vmul.f32 1.442695, %v429_v58  ;;  %779 = vset.pattern.permute.xlu0 %v827_v61 }
 0x55d   : > { %505 = vperm.xlu0 %779, %v399_v39  }
 0x55e   : > { %801 = vpow2.f32 %v430_v60 }
 0x561   : > { %782 = vset.pattern.permute.xlu0 %v826_v52 }
 0x568   : > { %v802_v30 = vpop.eup %801 }
 0x569   : > { %v432_v46 = vadd.f32 1.0, %v802_v30  ;;  %v435_v62 = vmul.f32 -0.5, %v802_v30  ;;  %v438_v0 = vand.u32 2147483647, %v802_v30 }
 0x56b   : > { %803 = vlog2.f32 %v432_v46  ;;  %v436_v63 = vadd.f32 1.0, %v435_v62  ;;  %vm439_vm10 = vcmp.lt.f32.partialorder %v438_v0, 0.0004427343 }
 0x56d   : > { %v437_v3 = vmul.f32 %v802_v30, %v436_v63 }
 0x575   : > { %v804_v1 = vpop.eup %803 }
 0x576   : > { %v434_v2 = vmul.f32 0.6931472, %v804_v1 }
 0x578   : > { %v440_v5 = vsel %vm439_vm10, %v437_v3, %v434_v2 }
 0x579   : > { %v441_v6 = vadd.f32 %v440_v5, %v427_v4 }
 0x57b   : > { %805 = vrsqrt.f32 %v441_v6  ;;  %vm444_vm11 = vcmp.eq.f32.partialorder %v441_v6, inf  ;;  %v447_v10 = vand.u32 2147483648, %v441_v6  ;;  %vm446_vm12 = vcmp.eq.f32.partialorder %v441_v6, 0.0 }
 0x585   : > { %v806_v7 = vpop.eup %805 }
 0x586   : > { %v443_v8 = vmul.f32 %v806_v7, %v441_v6 }
 0x588   : > { %v445_v12 = vsel %vm444_vm11, %v441_v6, %v443_v8 }
 0x589   : > { %v448_v13 = vsel %vm446_vm12, %v447_v10, %v445_v12 }
 0x58a   : > { %v452_v14 = vmul.f32 %v450_v11, %v448_v13 }
 0x58c   : > { %454 = vrot.lane.b32.xlu1 %v452_v14, %s820_s22 }
 0x590   : > { %470 = vperm.xlu1 %772, %v941_v59   ;;  %v458_v59 = vlaneseq }
 0x592   : > { %v459_v24 = vand.u32 127, %v458_v59 }
 0x594   : > { %775 = vset.pattern.permute.xlu1 %v824_v40  ;;  %vm460_vm13 = vcmp.eq.s32.totalorder %v459_v24, 0  ;;  %vm467_vm14 = vcmp.eq.s32.totalorder %v459_v24, 1  ;;  %vm474_vm15 = vcmp.eq.s32.totalorder %v459_v24, 2  ;;  %vm481_vm0 = vcmp.eq.s32.totalorder %v459_v24, 3 }
 0x595   : > { %477 = vperm.xlu1 %775, %v963_v23   ;;  %vm488_vm1 = vcmp.eq.s32.totalorder %v459_v24, 4  ;;  %vm495_vm2 = vcmp.eq.s32.totalorder %v459_v24, 5  ;;  %vm502_vm3 = vcmp.eq.s32.totalorder %v459_v24, 6  ;;  %vm509_vm4 = vcmp.eq.s32.totalorder %v459_v24, 7 }
 0x596   : > { %vm516_vm5 = vcmp.eq.s32.totalorder %v459_v24, 8  ;;  %vm518_vm6 = vcmp.eq.s32.totalorder %v459_v24, 9  ;;  %vm520_vm7 = vcmp.eq.s32.totalorder %v459_v24, 10  ;;  %vm522_vm8 = vcmp.eq.s32.totalorder %v459_v24, 11 }
 0x599   : > { %777 = vset.pattern.permute.xlu1 %v828_v15 }
 0x59a   : > { %491 = vperm.xlu1 %777, %v922_v45   ;;  %v466_v45 = vsel %vm460_vm13, %v464_v25, 0.0 }
 0x59e   : > { %778 = vset.pattern.permute.xlu1 %v829_v16 }
 0x59f   : > { %498 = vperm.xlu1 %778, %v945_v9  }
 0x5a3   : > { %780 = vset.pattern.permute.xlu1 %v830_v17 }
 0x5a4   : > { %512 = vperm.xlu1 %780, %v441_v6  }
 0x5a8   : > { %781 = vset.pattern.permute.xlu1 %v826_v52 }
 0x5d7   : > { %v485_v29 = vpop.permute.xlu0 %484 }
 0x5dc   : > { %v506_v35 = vpop.permute.xlu0 %505 }
 0x5fe   : > { %v455_v18 = vpop.permute.xlu1 %454 }
 0x5ff   : > { %v457_v19 = vadd.f32 %v455_v18, %v426_v26 }
 0x601   : > { %525 = vperm.xlu1 %781, %v457_v19  }
 0x60f   : > { %v471_v20 = vpop.permute.xlu1 %470 }
 0x610   : > { %v473_v27 = vsel %vm467_vm14, %v471_v20, %v466_v45 }
 0x614   : > { %v478_v22 = vpop.permute.xlu1 %477 }
 0x615   : > { %v480_v28 = vsel %vm474_vm15, %v478_v22, %v473_v27 }
 0x616   : > { %v487_v31 = vsel %vm481_vm0, %v485_v29, %v480_v28 }
 0x619   : > { %v492_v23 = vpop.permute.xlu1 %491 }
 0x61a   : > { %v494_v32 = vsel %vm488_vm1, %v492_v23, %v487_v31 }
 0x61e   : > { %v499_v9 = vpop.permute.xlu1 %498 }
 0x61f   : > { %v501_v33 = vsel %vm495_vm2, %v499_v9, %v494_v32 }
 0x620   : > { %v508_v36 = vsel %vm502_vm3, %v506_v35, %v501_v33 }
 0x623   : > { %v513_v34 = vpop.permute.xlu1 %512 }
 0x624   : > { %v515_v37 = vsel %vm509_vm4, %v513_v34, %v508_v36 }
 0x625   : > { %v517_v38 = vsel %vm516_vm5, %v937_v57, %v515_v37 }
 0x626   : > { %v519_v39 = vsel %vm518_vm6, %v959_v21, %v517_v38 }
 0x627   : > { %v521_v40 = vsel %vm520_vm7, %v975_v54, %v519_v39 }
 0x680   : > { %v526_v41 = vpop.permute.xlu1 %525 }
 0x681   : > { %v528_v42 = vsel %vm522_vm8, %v526_v41, %v521_v40 }
 0x682   : > { %529 = vst [vmem:[%s138_s6] sm:$0xff] %v528_v42 }
 0x683 PF: > { %s12_s9 = sadd.s32 1, %s813_s9  }
 0x684   : > { %p9_p4 = scmp.ge.s32.totalorder %s12_s9, 4  }
 0x686   :  { %11 = sbr.rel (!%p9_p4) target bundleno = 1 (0x1), region = 58 }

</bundles_post_ra>
